<compile_context>
chip_gen: v7x
topology: tpu7x:2x2x1
jax: 0.10.0
libtpu: 0.0.40
codegen_flags: <defaults>
</compile_context>

<pallas_src>
import functools

import jax
import jax.numpy as jnp
from jax.experimental import pallas as pl
from jax.experimental.pallas import tpu as pltpu


def _round_up(n, m):
    return ((n + m - 1) // m) * m


def _mlp_kernel(x_ref, w_ref, b_ref, o_ref, *, Kin, H, C):
    # x_ref: (TB, Kin)   w_ref: (Kin + 2H, N)   b_ref: (8, N)   o_ref: (TB, C)
    # Static, sublane/lane-aligned slices of the packed parameter buffers.
    x = x_ref[...]
    w1 = w_ref[0:Kin, 0:H]
    w2 = w_ref[Kin:Kin + H, 0:H]
    w3 = w_ref[Kin + H:Kin + 2 * H, 0:C]
    b1 = b_ref[0:1, 0:H]
    b2 = b_ref[1:2, 0:H]
    b3 = b_ref[2:3, 0:C]

    h1 = jnp.dot(x, w1, preferred_element_type=jnp.float32) + b1
    h1 = jnp.maximum(h1, 0.0)
    h2 = jnp.dot(h1, w2, preferred_element_type=jnp.float32) + b2
    h2 = jnp.maximum(h2, 0.0)
    out = jnp.dot(h2, w3, preferred_element_type=jnp.float32) + b3
    o_ref[...] = out.astype(o_ref.dtype)


def pack_params(w1, b1, w2, b2, w3, b3):
    """One-time parameter packing (hoisted out of the per-call forward path).

    Zero padding keeps the math exact: padded rows/cols contribute 0 and
    ReLU(0 + 0) = 0 on padded hidden columns is benign.
    """
    in_features, hidden = w1.shape
    num_classes = w3.shape[1]

    Kin = _round_up(in_features, 8)      # sublane-aligned row offsets for w2/w3
    H = _round_up(hidden, 128)
    C = _round_up(num_classes, 128)
    N = max(H, C)
    # TODO(synk): bump the N tile to 256 on v6e/v7x when hidden/num_classes
    # scale up (their MXUs are 2x256^2); 128 already matches v5e's 4x128^2.

    f32 = jnp.float32

    def pad2(a, rows, cols):
        a = jnp.asarray(a, f32)
        if a.ndim == 1:
            a = a.reshape(1, -1)
        return jnp.pad(a, ((0, rows - a.shape[0]), (0, cols - a.shape[1])))

    w_pack = jnp.concatenate(
        [pad2(w1, Kin, N), pad2(w2, H, N), pad2(w3, H, N)], axis=0)   # (Kin+2H, N)
    b_pack = jnp.concatenate(
        [pad2(b1, 1, N), pad2(b2, 1, N), pad2(b3, 1, N),
         jnp.zeros((5, N), f32)], axis=0)                             # (8, N)

    dims = dict(in_features=in_features, hidden=hidden, num_classes=num_classes,
                Kin=Kin, H=H, C=C, N=N)
    return w_pack, b_pack, dims


def _choose_batch_tiling(B, batch_tile):
    """TB multiple of 8; even step count (>=2 when B>=16); minimal over-pad."""
    B8 = _round_up(B, 8)
    tb_cap = max(8, (min(batch_tile, B8) // 8) * 8)   # force multiple of 8
    steps = -(-B8 // tb_cap)                          # ceil division
    if B8 >= 16:
        steps = max(steps, 2)                         # give v7x's 2nd TC work
        if steps % 2:
            steps += 1                                # balanced across 2 TCs
    TB = _round_up(-(-B8 // steps), 8)
    steps = -(-B8 // TB)
    return TB, steps, steps * TB


def neural_net_forward(x, w_pack, b_pack, dims, *, batch_tile=512, unpad=True):
    """Fused 3-layer MLP forward as one Pallas call (params pre-packed)."""
    B = x.shape[0]
    Kin, H, C, N = dims["Kin"], dims["H"], dims["C"], dims["N"]
    num_classes = dims["num_classes"]

    TB, steps, Bp = _choose_batch_tiling(B, batch_tile)

    x = jnp.asarray(x, jnp.float32)
    # Pad rows to the batch tile and features only up to a multiple of 8
    # (no 128-wide lane padding of the activation stream; zero pad is exact).
    x = jnp.pad(x, ((0, Bp - B), (0, Kin - x.shape[1])))

    # Explicit VMEM budget: double-buffered (TB,Kin) input + (TB,C) output
    # tiles plus single-buffered packed params, 4x headroom, capped at v7x's
    # 64 MiB physical VMEM (tiles are re-derived per call, never assumed).
    tile_bytes = 4 * (2 * TB * Kin + 2 * TB * C + (Kin + 2 * H) * N + 8 * N)
    vmem_limit = int(min(max(4 * tile_bytes, 8 << 20), 64 << 20))

    kernel = functools.partial(_mlp_kernel, Kin=Kin, H=H, C=C)

    out_padded = pl.pallas_call(
        kernel,
        out_shape=jax.ShapeDtypeStruct((Bp, C), jnp.float32),
        grid=(steps,),
        in_specs=[
            # Batch-tiled activations at (near-)true feature width.
            pl.BlockSpec((TB, Kin), lambda i: (i, 0)),
            # Constant block index -> params resident in VMEM, DMA'd once;
            # single-buffered since they never change across grid steps.
            pl.BlockSpec((Kin + 2 * H, N), lambda i: (0, 0),
                         pipeline_mode=pl.Buffered(1)),
            pl.BlockSpec((8, N), lambda i: (0, 0),
                         pipeline_mode=pl.Buffered(1)),
        ],
        out_specs=pl.BlockSpec((TB, C), lambda i: (i, 0)),   # lane-dense store
        compiler_params=pltpu.CompilerParams(
            dimension_semantics=("parallel",),
            vmem_limit_bytes=vmem_limit),
    )(x, w_pack, b_pack)

    if not unpad:
        # Padded (Bp, C) slab: lets a downstream consumer slice lazily and
        # avoids an extra output-sized HBM round trip per call.
        return out_padded
    return out_padded[:B, :num_classes]


def init_linear(key, fan_in, fan_out):
    # Deterministic init mimicking nn.Linear's uniform(-1/sqrt(fan_in), ...).
    kw, kb = jax.random.split(key)
    bound = 1.0 / jnp.sqrt(fan_in)
    w = jax.random.uniform(kw, (fan_in, fan_out), jnp.float32, -bound, bound)
    b = jax.random.uniform(kb, (1, fan_out), jnp.float32, -bound, bound)
    return w, b


def _ref_forward(x, w1, b1, w2, b2, w3, b3):
    h = jnp.maximum(x @ w1 + b1, 0.0)
    h = jnp.maximum(h @ w2 + b2, 0.0)
    return h @ w3 + b3


if __name__ == "__main__":
    # Small shapes consistent with the module's forward
    # (hidden_size/input_size come from a checkpoint in the original script;
    # hard-coded here since no file I/O is allowed).
    batch = 2
    input_size = 32
    hidden_size = 32
    num_classes = 8

    key = jax.random.PRNGKey(0)
    kx, k1, k2, k3 = jax.random.split(key, 4)

    x = jax.random.normal(kx, (batch, input_size), jnp.float32)
    w1, b1 = init_linear(k1, input_size, hidden_size)
    w2, b2 = init_linear(k2, hidden_size, hidden_size)
    w3, b3 = init_linear(k3, hidden_size, num_classes)

    # One-time packing (hoisted out of the forward path).
    w_pack, b_pack, dims = jax.block_until_ready(
        pack_params(w1, b1, w2, b2, w3, b3))

    out = jax.block_until_ready(neural_net_forward(x, w_pack, b_pack, dims))
    ref = _ref_forward(x, w1, b1, w2, b2, w3, b3)
    assert out.shape == (batch, num_classes)
    assert jnp.allclose(out, ref, atol=1e-5, rtol=1e-5)

    # Larger, non-tile-multiple batch: exercises >1 grid step (even count for
    # v7x's two TCs), remainder-aware tiling, and resident packed params.
    big_batch = 520
    xb = jax.random.normal(jax.random.PRNGKey(1), (big_batch, input_size),
                           jnp.float32)
    out_big = jax.block_until_ready(
        neural_net_forward(xb, w_pack, b_pack, dims))
    ref_big = _ref_forward(xb, w1, b1, w2, b2, w3, b3)
    assert out_big.shape == (big_batch, num_classes)
    assert jnp.allclose(out_big, ref_big, atol=1e-4, rtol=1e-4)

    print("KERNEL_OK")
</pallas_src>

<mosaic_0001>
module attributes {stable_mosaic.version = 11 : i64} {
  func.func @_mlp_kernel(%arg0: i32, %arg1: memref<8x32xf32, #tpu.memory_space<vmem>>, %arg2: memref<288x128xf32, #tpu.memory_space<vmem>>, %arg3: memref<8x128xf32, #tpu.memory_space<vmem>>, %arg4: memref<8x128xf32, #tpu.memory_space<vmem>>) attributes {dimension_semantics = [#tpu.dimension_semantics<parallel>], iteration_bounds = array<i64: 1>, scalar_prefetch = 0 : i64, scratch_operands = 0 : i64, tpu.core_type = #tpu.core_type<tc>, window_params = [{transform_indices = @transform_0, window_bounds = array<i64: 8, 32>}, {pipeline_mode = #tpu.pipeline_mode<synchronous>, transform_indices = @transform_1, window_bounds = array<i64: 288, 128>}, {pipeline_mode = #tpu.pipeline_mode<synchronous>, transform_indices = @transform_2, window_bounds = array<i64: 8, 128>}, {transform_indices = @transform_3, window_bounds = array<i64: 8, 128>}]} {
    %c0 = arith.constant 0 : index
    %c0_0 = arith.constant 0 : index
    %0 = vector.load %arg1[%c0, %c0_0] : memref<8x32xf32, #tpu.memory_space<vmem>>, vector<8x32xf32>
    %c0_1 = arith.constant 0 : index
    %c0_2 = arith.constant 0 : index
    %1 = vector.load %arg2[%c0_1, %c0_2] : memref<288x128xf32, #tpu.memory_space<vmem>>, vector<32x128xf32>
    %c32 = arith.constant 32 : index
    %c0_3 = arith.constant 0 : index
    %2 = vector.load %arg2[%c32, %c0_3] : memref<288x128xf32, #tpu.memory_space<vmem>>, vector<128x128xf32>
    %c160 = arith.constant 160 : index
    %c0_4 = arith.constant 0 : index
    %3 = vector.load %arg2[%c160, %c0_4] : memref<288x128xf32, #tpu.memory_space<vmem>>, vector<128x128xf32>
    %c0_5 = arith.constant 0 : index
    %c0_6 = arith.constant 0 : index
    %4 = vector.load %arg3[%c0_5, %c0_6] : memref<8x128xf32, #tpu.memory_space<vmem>>, vector<1x128xf32>
    %c1 = arith.constant 1 : index
    %c0_7 = arith.constant 0 : index
    %5 = vector.load %arg3[%c1, %c0_7] : memref<8x128xf32, #tpu.memory_space<vmem>>, vector<1x128xf32>
    %c2 = arith.constant 2 : index
    %c0_8 = arith.constant 0 : index
    %6 = vector.load %arg3[%c2, %c0_8] : memref<8x128xf32, #tpu.memory_space<vmem>>, vector<1x128xf32>
    %cst = arith.constant dense<0.000000e+00> : vector<8x128xf32>
    %7 = tpu.matmul %0, %1, %cst {dimension_numbers = #tpu.dot_dimension_numbers<[1], [0], [0], [1], [0, 0, 1, 1], [], []>} : vector<8x32xf32>, vector<32x128xf32>, vector<8x128xf32> -> vector<8x128xf32>
    %8 = vector.broadcast %4 : vector<1x128xf32> to vector<8x128xf32>
    %9 = arith.addf %7, %8 : vector<8x128xf32>
    %cst_9 = arith.constant 0.000000e+00 : f32
    %10 = vector.broadcast %cst_9 : f32 to vector<8x128xf32>
    %11 = arith.maximumf %9, %10 : vector<8x128xf32>
    %cst_10 = arith.constant dense<0.000000e+00> : vector<8x128xf32>
    %12 = tpu.matmul %11, %2, %cst_10 {dimension_numbers = #tpu.dot_dimension_numbers<[1], [0], [0], [1], [0, 0, 1, 1], [], []>} : vector<8x128xf32>, vector<128x128xf32>, vector<8x128xf32> -> vector<8x128xf32>
    %13 = vector.broadcast %5 : vector<1x128xf32> to vector<8x128xf32>
    %14 = arith.addf %12, %13 : vector<8x128xf32>
    %cst_11 = arith.constant 0.000000e+00 : f32
    %15 = vector.broadcast %cst_11 : f32 to vector<8x128xf32>
    %16 = arith.maximumf %14, %15 : vector<8x128xf32>
    %cst_12 = arith.constant dense<0.000000e+00> : vector<8x128xf32>
    %17 = tpu.matmul %16, %3, %cst_12 {dimension_numbers = #tpu.dot_dimension_numbers<[1], [0], [0], [1], [0, 0, 1, 1], [], []>} : vector<8x128xf32>, vector<128x128xf32>, vector<8x128xf32> -> vector<8x128xf32>
    %18 = vector.broadcast %6 : vector<1x128xf32> to vector<8x128xf32>
    %19 = arith.addf %17, %18 : vector<8x128xf32>
    %c0_13 = arith.constant 0 : index
    %c0_14 = arith.constant 0 : index
    %20 = vector.load %arg4[%c0_13, %c0_14] : memref<8x128xf32, #tpu.memory_space<vmem>>, vector<8x128xf32>
    tpu.vector_store %arg4[%c0_13, %c0_14], %19 {strides = array<i32>} : memref<8x128xf32, #tpu.memory_space<vmem>>, vector<8x128xf32>,
    return
  }
  func.func @transform_0(%arg0: i32) -> (i32, i32) {
    %c0_i32 = arith.constant 0 : i32
    %c0_i32_0 = arith.constant 0 : i32
    return %arg0, %c0_i32 : i32, i32
  }
  func.func @transform_1(%arg0: i32) -> (i32, i32) {
    %c0_i32 = arith.constant 0 : i32
    %c0_i32_0 = arith.constant 0 : i32
    %c0_i32_1 = arith.constant 0 : i32
    return %c0_i32, %c0_i32_0 : i32, i32
  }
  func.func @transform_2(%arg0: i32) -> (i32, i32) {
    %c0_i32 = arith.constant 0 : i32
    %c0_i32_0 = arith.constant 0 : i32
    %c0_i32_1 = arith.constant 0 : i32
    return %c0_i32, %c0_i32_0 : i32, i32
  }
  func.func @transform_3(%arg0: i32) -> (i32, i32) {
    %c0_i32 = arith.constant 0 : i32
    %c0_i32_0 = arith.constant 0 : i32
    return %arg0, %c0_i32 : i32, i32
  }
}

</mosaic_0001>

<bundles_post_ra>
// kernel: tpu_custom_call.1
= control target key start
LH: loop header
LB: loop body
LE: loop exit
PB: predicated region body
PF: predicated region fallthrough
CT: control target
= control target key end

     0   :  { %8 = vsyncpa [#allocation3], 0  ;;  %s716_s0 = inlined_call_operand.hbm [shape: f32[8,32], index: 0, kind: input, shape index: {}]   ;;  %s717_s1 = inlined_call_operand.hbm [shape: f32[288,128], index: 1, kind: input, shape index: {}]   ;;  %s718_s2 = inlined_call_operand.hbm [shape: f32[8,128], index: 2, kind: input, shape index: {}]   ;;  %s719_s3 = inlined_call_operand.hbm [shape: f32[8,128], index: 3, kind: output, shape index: {}]  }
   0x1   :  { %9 = vsyncpa [#allocation6], 0 }
   0x2   :  { %10 = vsyncpa [#allocation4], 0  ;;  %s618_s12 = smov [#allocation5]   ;;  %s524_s16 = scalar_lea.hbm %s717_s1, 4608 }
   0x3   :  { %s26_s13 = sshll.u32 %s618_s12, 4  ;;  %p525_p0 = scmp.ne.s32.totalorder %s717_s1, %s524_s16  ;;  %s27_s13 = int_to_ptr.vmem [resolvable:$true] %s26_s13 }
   0x4   :  { %p528_p1 = scmp.lt.u32.totalorder %s524_s16, %s717_s1 }
   0x6   :  { %p530_p2 = pnand %p528_p1, %p525_p0 }
   0x8   :  { %533 = shalt.err (!%p530_p2)
}
   0x9   :  { %s534_s21 = scalar_lea.vmem %s27_s13, 4608  ;;  %p539_p4 = scmp.lt.s32.totalorder %s27_s13, %s27_s13 }
   0xa   :  { %p535_p3 = scmp.ne.s32.totalorder %s27_s13, %s534_s21  ;;  %p540_p5 = scmp.lt.s32.totalorder %s534_s21, %s534_s21 }
   0xc   :  { %p541_p6 = por %p540_p5, %p539_p4 }
   0xe   :  { %p542_p7 = pnand %p541_p6, %p535_p3 }
  0x10   :  { %545 = shalt.err (!%p542_p7)
}
  0x11   :  { %s619_s22 = smov 128   ;;  %s620_s23 = smov 8  }
  0x12   :  { %32 = dma.hbm_to_vmem [thread:$0]  %s717_s1, 4608, %s27_s13, [#allocation6], %s619_s22, %s619_s22, %s620_s23  }
  0x13   :  { %s621_s26 = smov [#allocation2]   ;;  %s622_s28 = smov [#allocation7]  }
  0x14   :  { %s17_s27 = sshll.u32 %s621_s26, 4  ;;  %s39_s29 = sshll.u32 %s622_s28, 4  ;;  %s18_s27 = int_to_ptr.vmem [resolvable:$true] %s17_s27  ;;  %s40_s29 = int_to_ptr.vmem [resolvable:$true] %s39_s29 }
  0x15   :  { %s546_s5 = scalar_lea.hbm %s716_s0, 128 }
  0x16   :  { %p547_p8 = scmp.ne.s32.totalorder %s716_s0, %s546_s5  ;;  %p550_p9 = scmp.lt.u32.totalorder %s546_s5, %s716_s0 }
  0x18   :  { %p552_p10 = pnand %p550_p9, %p547_p8 }
  0x1a   :  { %555 = shalt.err (!%p552_p10)
}
  0x1b   :  { %s556_s1 = scalar_lea.vmem %s18_s27, 128  ;;  %p561_p12 = scmp.lt.s32.totalorder %s18_s27, %s18_s27 }
  0x1c   :  { %p557_p11 = scmp.ne.s32.totalorder %s18_s27, %s556_s1  ;;  %p562_p13 = scmp.lt.s32.totalorder %s556_s1, %s556_s1 }
  0x1e   :  { %p563_p0 = por %p562_p13, %p561_p12 }
  0x20   :  { %p564_p1 = pnand %p563_p0, %p557_p11 }
  0x22   :  { %567 = shalt.err (!%p564_p1)
}
  0x23   :  { %20 = dma.hbm_to_vmem [thread:$0]  %s716_s0, 128, %s18_s27, [#allocation3]  }
  0x24   :  { %s568_s14 = scalar_lea.hbm %s718_s2, 128 }
  0x25   :  { %p569_p2 = scmp.ne.s32.totalorder %s718_s2, %s568_s14  ;;  %p572_p3 = scmp.lt.u32.totalorder %s568_s14, %s718_s2 }
  0x27   :  { %p574_p4 = pnand %p572_p3, %p569_p2 }
  0x29   :  { %577 = shalt.err (!%p574_p4)
}
  0x2a   :  { %s578_s19 = scalar_lea.vmem %s40_s29, 128  ;;  %p583_p6 = scmp.lt.s32.totalorder %s40_s29, %s40_s29 }
  0x2b   :  { %p579_p5 = scmp.ne.s32.totalorder %s40_s29, %s578_s19  ;;  %p584_p7 = scmp.lt.s32.totalorder %s578_s19, %s578_s19 }
  0x2d   :  { %p585_p8 = por %p584_p7, %p583_p6 }
  0x2f   :  { %p586_p9 = pnand %p585_p8, %p579_p5 }
  0x31   :  { %589 = shalt.err (!%p586_p9)
}
  0x32   :  { %42 = dma.hbm_to_vmem [thread:$0]  %s718_s2, 128, %s40_s29, [#allocation6]  }
  0x33   :  { %612 = dma.done.wait [#allocation3], 128  }
  0x34   :  { %613 = vsyncadd [#allocation3], 4294967168 }
  0x35   :  { %614 = dma.done.wait [#allocation6], 4736  }
  0x36   :  { %615 = vsyncadd [#allocation6], 4294962560  ;;  %v623_v0 = vmov 0.0|0.0   ;;  %vm624_vm0 = vmmov 0   ;;  %v625_v1 = vmov 0.0   ;;  %v53_v2 = vld [vmem:[#allocation5] sm:$0xff] }
  0x37   :  { %461 = vmatprep.subr.bf16.mxu0 %v623_v0  ;;  %388 = vmatprep.mubr.msk.f32.mxu0 %vm624_vm0, %v625_v1  ;;  %v54_v3 = vld [vmem:[#allocation5 + $0x8] sm:$0xff]  ;;  %v55_v4 = vld [vmem:[#allocation5 + $0x10] sm:$0xff]  ;;  %v56_v6 = vld [vmem:[#allocation5 + $0x18] sm:$0xff]  ;;  %vm96_vm1 = vcmask 261120   ;;  %s626_s2 = smov [#allocation8]  }
  0x38   :  { %467 = vmatprep.subr.bf16.mxu1 %v623_v0  ;;  %423 = vmatprep.mubr.msk.f32.mxu1 %vm624_vm0, %v625_v1  ;;  %v462_v5 = vpack.c.bf16 %v54_v3, %v53_v2  ;;  %v57_v7 = vld [vmem:[#allocation5 + $0x20] sm:$0xff]  ;;  %v58_v8 = vld [vmem:[#allocation5 + $0x28] sm:$0xff]  ;;  %v59_v9 = vld [vmem:[#allocation5 + $0x30] sm:$0xff]  ;;  %v465_v11 = vpack.c.bf16 %v56_v6, %v55_v4  ;;  %s327_s21 = sshll.u32 %s626_s2, 4  ;;  %s328_s21 = int_to_ptr.vmem [resolvable:$true] %s327_s21 }
  0x39   :  { %v60_v10 = vld [vmem:[#allocation5 + $0x38] sm:$0xff]  ;;  %v468_v12 = vpack.c.bf16 %v58_v8, %v57_v7  ;;  %v61_v14 = vld [vmem:[#allocation5 + $0x40] sm:$0xff]  ;;  %v62_v15 = vld [vmem:[#allocation5 + $0x48] sm:$0xff]  ;;  %s590_s22 = scalar_lea.vmem %s328_s21, 128  ;;  %p595_p11 = scmp.lt.s32.totalorder %s328_s21, %s328_s21 }
  0x3a   :  { %463 = vmatpush3.bf16.msra.mxu0 %v462_v5  ;;  %v471_v13 = vpack.c.bf16 %v60_v10, %v59_v9  ;;  %v52_v16 = vld [vmem:[#allocation2] sm:$0xff]  ;;  %v474_v17 = vpack.c.bf16 %v62_v15, %v61_v14  ;;  %v63_v18 = vld [vmem:[#allocation5 + $0x50] sm:$0xff]  ;;  %v65_v21 = vld [vmem:[#allocation5 + $0x60] sm:$0xff]  ;;  %p591_p10 = scmp.ne.s32.totalorder %s328_s21, %s590_s22  ;;  %p596_p12 = scmp.lt.s32.totalorder %s590_s22, %s590_s22 }
  0x3b   :  { %464 = vmatprep.subr.bf16.mxu0 %v623_v0  ;;  %469 = vmatpush3.bf16.msra.mxu1 %v468_v12  ;;  %v64_v19 = vld [vmem:[#allocation5 + $0x58] sm:$0xff]  ;;  %v66_v22 = vld [vmem:[#allocation5 + $0x68] sm:$0xff]  ;;  %v67_v24 = vld [vmem:[#allocation5 + $0x70] sm:$0xff] }
  0x3c   :  { %470 = vmatprep.subr.bf16.mxu1 %v623_v0  ;;  %v477_v20 = vpack.c.bf16 %v64_v19, %v63_v18  ;;  %v480_v23 = vpack.c.bf16 %v66_v22, %v65_v21  ;;  %v68_v25 = vld [vmem:[#allocation5 + $0x78] sm:$0xff]  ;;  %v69_v27 = vld [vmem:[#allocation5 + $0x80] sm:$0xff]  ;;  %v70_v28 = vld [vmem:[#allocation5 + $0x88] sm:$0xff]  ;;  %p597_p13 = por %p596_p12, %p595_p11 }
  0x3d   :  { %v483_v26 = vpack.c.bf16 %v68_v25, %v67_v24  ;;  %v486_v29 = vpack.c.bf16 %v70_v28, %v69_v27  ;;  %v71_v30 = vld [vmem:[#allocation5 + $0x90] sm:$0xff]  ;;  %v72_v31 = vld [vmem:[#allocation5 + $0x98] sm:$0xff]  ;;  %v73_v33 = vld [vmem:[#allocation5 + $0xa0] sm:$0xff] }
  0x3e   :  { %466 = vmatpush3.bf16.msra.mxu0 %v465_v11  ;;  %v489_v32 = vpack.c.bf16 %v72_v31, %v71_v30  ;;  %v74_v34 = vld [vmem:[#allocation5 + $0xa8] sm:$0xff]  ;;  %v75_v35 = vld [vmem:[#allocation5 + $0xb0] sm:$0xff]  ;;  %v76_v37 = vld [vmem:[#allocation5 + $0xb8] sm:$0xff]  ;;  %p598_p0 = pnand %p597_p13, %p591_p10 }
  0x3f   :  { %491 = vmatprep.subr.bf16.mxu0 %v623_v0  ;;  %472 = vmatpush3.bf16.msra.mxu1 %v471_v13  ;;  %v492_v36 = vpack.c.bf16 %v74_v34, %v73_v33  ;;  %v495_v38 = vpack.c.bf16 %v76_v37, %v75_v35  ;;  %v77_v39 = vld [vmem:[#allocation5 + $0xc0] sm:$0xff]  ;;  %v78_v40 = vld [vmem:[#allocation5 + $0xc8] sm:$0xff]  ;;  %v79_v42 = vld [vmem:[#allocation5 + $0xd0] sm:$0xff] }
  0x40   :  { %473 = vmatprep.subr.bf16.mxu1 %v623_v0  ;;  %v498_v41 = vpack.c.bf16 %v78_v40, %v77_v39  ;;  %v80_v43 = vld [vmem:[#allocation5 + $0xd8] sm:$0xff]  ;;  %v81_v45 = vld [vmem:[#allocation5 + $0xe0] sm:$0xff]  ;;  %v82_v46 = vld [vmem:[#allocation5 + $0xe8] sm:$0xff] }
  0x41   :  { %389 = vmatmul.mubr.msk.f32.vlgmr.msra.gmra.mrb[0].mxu0 %vm96_vm1, %v52_v16  ;;  %v501_v44 = vpack.c.bf16 %v80_v43, %v79_v42  ;;  %v504_v47 = vpack.c.bf16 %v82_v46, %v81_v45  ;;  %v83_v48 = vld [vmem:[#allocation5 + $0xf0] sm:$0xff]  ;;  %v84_v49 = vld [vmem:[#allocation5 + $0xf8] sm:$0xff]  ;;  %v85_v51 = vld [vmem:[#allocation5 + $0x100] sm:$0xff] }
  0x42   :  { %458 = vmatprep.mubr.msk.f32.mxu0 %vm624_vm0, %v625_v1  ;;  %493 = vmatpush3.bf16.msra.mxu0 %v492_v36  ;;  %v507_v50 = vpack.c.bf16 %v84_v49, %v83_v48  ;;  %v86_v52 = vld [vmem:[#allocation5 + $0x108] sm:$0xff]  ;;  %v337_v54 = vld [vmem:[#allocation7] ss:$0 sm:$0xff]  ;;  %v87_v59 = vld [vmem:[#allocation5 + $0x110] sm:$0xff] }
  0x43   :  { %475 = vmatpush3.bf16.msra.mxu1 %v474_v17  ;;  %494 = vmatprep.subr.bf16.mxu0 %v623_v0  ;;  %v510_v53 = vpack.c.bf16 %v86_v52, %v85_v51  ;;  %v88_v60 = vld [vmem:[#allocation5 + $0x118] sm:$0xff]  ;;  %v339_v62 = vld [vmem:[#allocation7 + $0x1] ss:$0 sm:$0xff]  ;;  %v340_v4 = vld [vmem:[#allocation7 + $0x2] ss:$0 sm:$0xff] }
  0x44   :  { %476 = vmatprep.subr.bf16.mxu1 %v623_v0  ;;  %v513_v61 = vpack.c.bf16 %v88_v60, %v87_v59 }
  0x46   :  { %496 = vmatpush3.bf16.msra.mxu0 %v495_v38 }
  0x47   :  { %478 = vmatpush3.bf16.msra.mxu1 %v477_v20  ;;  %497 = vmatprep.subr.bf16.mxu0 %v623_v0 }
  0x48   :  { %479 = vmatprep.subr.bf16.mxu1 %v623_v0 }
  0x4a   :  { %499 = vmatpush3.bf16.msra.mxu0 %v498_v41 }
  0x4b   :  { %481 = vmatpush3.bf16.msra.mxu1 %v480_v23  ;;  %500 = vmatprep.subr.bf16.mxu0 %v623_v0 }
  0x4c   :  { %482 = vmatprep.subr.bf16.mxu1 %v623_v0 }
  0x4e   :  { %502 = vmatpush3.bf16.msra.mxu0 %v501_v44 }
  0x4f   :  { %484 = vmatpush3.bf16.msra.mxu1 %v483_v26  ;;  %503 = vmatprep.subr.bf16.mxu0 %v623_v0 }
  0x50   :  { %485 = vmatprep.subr.bf16.mxu1 %v623_v0 }
  0x52   :  { %505 = vmatpush3.bf16.msra.mxu0 %v504_v47 }
  0x53   :  { %487 = vmatpush3.bf16.msra.mxu1 %v486_v29  ;;  %506 = vmatprep.subr.bf16.mxu0 %v623_v0 }
  0x54   :  { %488 = vmatprep.subr.bf16.mxu1 %v623_v0 }
  0x56   :  { %508 = vmatpush3.bf16.msra.mxu0 %v507_v50 }
  0x57   :  { %490 = vmatpush3.bf16.msra.mxu1 %v489_v32  ;;  %509 = vmatprep.subr.bf16.mxu0 %v623_v0 }
  0x5a   :  { %511 = vmatpush3.bf16.msra.mxu0 %v510_v53 }
  0x5b   :  { %512 = vmatprep.subr.bf16.mxu0 %v623_v0 }
  0x5e   :  { %514 = vmatpush3.bf16.msra.mxu0 %v513_v61 }
 0x114   :  { %v166_v55 = vpop.f32.mrb[0].mxu0 }
 0x115   :  { %v167_v56 = vadd.f32 %v337_v54, %v166_v55  ;;  %v390_v57 = vpop.f32.mrb[1].mxu0 }
 0x117   :  { %v170_v58 = vmax.f32 %v167_v56, 0.0 }
 0x119   :  { %424 = vmatmul.mubr.f32.vlgmr.msra.gmra.mrb[0].mxu1 %v170_v58 }
 0x1ec   :  { %v241_v63 = vpop.f32.mrb[0].mxu1 }
 0x1ed   :  { %v242_v1 = vadd.f32 %v339_v62, %v241_v63  ;;  %v425_v2 = vpop.f32.mrb[1].mxu1 }
 0x1ef   :  { %v245_v3 = vmax.f32 %v242_v1, 0.0 }
 0x1f1   :  { %459 = vmatmul.mubr.f32.vlgmr.msra.gmra.mrb[2].mxu0 %v245_v3 }
 0x2c4   :  { %v316_v0 = vpop.f32.mrb[2].mxu0 }
 0x2c5   :  { %v317_v5 = vadd.f32 %v340_v4, %v316_v0  ;;  %v460_v6 = vpop.f32.mrb[3].mxu0 }
 0x2c7   :  { %320 = vst [vmem:[#allocation8] sm:$0xff] %v317_v5 }
 0x2c8   :  { %601 = shalt.err (!%p598_p0)
}
 0x2c9   :  { %s602_s25 = scalar_lea.hbm %s719_s3, 128 }
 0x2ca   :  { %p603_p1 = scmp.ne.s32.totalorder %s719_s3, %s602_s25  ;;  %p606_p2 = scmp.lt.u32.totalorder %s602_s25, %s719_s3 }
 0x2cc   :  { %p608_p3 = pnand %p606_p2, %p603_p1 }
 0x2ce   :  { %611 = shalt.err (!%p608_p3)
}
 0x2cf   :  { %330 = dma.vmem_to_hbm [thread:$0]  %s328_s21, 128, %s719_s3, [#allocation4]  }
 0x2d0   :  { %616 = dma.done.wait [#allocation4], 128  }
 0x2d1   :  { %617 = vsyncadd [#allocation4], 4294967168 }
 0x2d2   :  { %334 = vsyncpa [#allocation3], 1 }
 0x2d3   :  { %335 = vsyncpa [#allocation6], 1 }
 0x2d4   :  { %336 = vsyncpa [#allocation4], 1 }

</bundles_post_ra>
